<compile_context>
chip_gen: v6e
topology: v6e:2x2x1
jax: 0.10.0
libtpu: 0.0.40
codegen_flags: <defaults>
</compile_context>

<pallas_src>
import functools
import math

import jax
import jax.numpy as jnp
from jax.experimental import pallas as pl
from jax.experimental.pallas import tpu as pltpu


LANE = 128          # lane width: pad feature dims to a multiple of this
SUBLANE_BF16 = 16   # bf16 sublane packing: pad batch tile to a multiple of this


# ----------------------------- activation ----------------------------------
def _act(x, act_name):
    if act_name == "ReLU":
        return jnp.maximum(x, 0.0)
    elif act_name == "erf":
        return jax.lax.erf(x)
    elif act_name == "GELU":
        # exact (erf-based) GELU, matching torch.nn.GELU() default
        return 0.5 * x * (1.0 + jax.lax.erf(x / math.sqrt(2.0)))
    elif act_name == "Linear":
        return x
    else:
        raise RuntimeError("Error: use only ReLU, erf, GELU or Linear")


def _round_up(x, m):
    return ((x + m - 1) // m) * m


def _pad_to(a, target_shape):
    """Zero-pad `a` on the high side of each axis up to `target_shape`."""
    widths = [(0, t - s) for s, t in zip(a.shape, target_shape)]
    if all(w == (0, 0) for w in widths):
        return a
    return jnp.pad(a, widths)


# ------------------------------- kernel -------------------------------------
def resfcc_kernel(x_ref, w0_ref, b0_ref, wh_ref, bh_ref, wo_ref, bo_ref, o_ref,
                  *, n_hidden, mu, act_name):
    # x_ref: (tm, Din_p) bf16        w0_ref: (Din_p, H_p) bf16   b0_ref: (1, H_p) f32
    # wh_ref: (n_hidden, H_p, H_p)   bh_ref: (n_hidden, 1, H_p)
    # wo_ref: (H_p, Out_p) bf16      bo_ref: (1, Out_p) f32      o_ref: (tm, Out_p) f32
    #
    # MXU: bf16 operands, f32 accumulation.  VPU/EUP math (bias, act, residual)
    # stays in f32 — important on v5e which has no bf16 VPU/EUP.
    h = jnp.dot(x_ref[...], w0_ref[...],
                preferred_element_type=jnp.float32) + b0_ref[...]
    # n_hidden is static and small -> unrolled; wh_ref[i] is a static (H_p, H_p) load.
    # TODO(synk): switch this to lax.fori_loop over a streamed wh grid axis if
    # n_hidden / h_size grow large enough that resident stacked weights no
    # longer fit VMEM (notably v7x's 64 MiB).
    for i in range(n_hidden):
        a = _act(h, act_name).astype(wh_ref.dtype)
        hres = h if mu == 1.0 else mu * h
        h = hres + jnp.dot(a, wh_ref[i],
                           preferred_element_type=jnp.float32) + bh_ref[i]
    a = _act(h, act_name).astype(wo_ref.dtype)
    out = jnp.dot(a, wo_ref[...],
                  preferred_element_type=jnp.float32) + bo_ref[...]
    o_ref[...] = out.astype(o_ref.dtype)


# ------------------------------- wrapper -------------------------------------
def resfcc_forward(x, params, *, mu, act_name, tm=256):
    """x: (N, C, H, W) or already-flat (N, D). params: dict of f32 weights."""
    n = x.shape[0]
    xf = x.reshape(n, -1)
    in_size = xf.shape[1]

    w0, b0 = params["w0"], params["b0"]
    wh, bh = params["wh"], params["bh"]
    wo, bo = params["wo"], params["bo"]
    n_hidden = wh.shape[0]
    h_size = w0.shape[1]
    out_size = wo.shape[1]

    # ---- lane-dense padded sizes --------------------------------------------
    din_p = _round_up(in_size, LANE)
    h_p = _round_up(h_size, LANE)
    out_p = _round_up(out_size, LANE)

    # ---- batch tiling (multiple of 16 for bf16 sublane packing, MXU-sized) ---
    tm = _round_up(tm, SUBLANE_BF16)
    n16 = _round_up(max(n, 1), SUBLANE_BF16)
    tm_eff = min(tm, n16)
    n_pad = _round_up(n, tm_eff)
    grid = n_pad // tm_eff

    # ---- pad + cast operands (zero-padded rows/cols contribute exactly 0) ----
    xb = _pad_to(xf.astype(jnp.float32), (n_pad, din_p)).astype(jnp.bfloat16)
    w0b = _pad_to(w0, (din_p, h_p)).astype(jnp.bfloat16)
    b0p = _pad_to(b0, (1, h_p)).astype(jnp.float32)
    whb = _pad_to(wh, (n_hidden, h_p, h_p)).astype(jnp.bfloat16)
    bhp = _pad_to(bh, (n_hidden, 1, h_p)).astype(jnp.float32)
    wob = _pad_to(wo, (h_p, out_p)).astype(jnp.bfloat16)
    bop = _pad_to(bo, (1, out_p)).astype(jnp.float32)

    # ---- VMEM budget: resident weights + double-buffered x/out tiles ---------
    weight_bytes = (din_p * h_p + n_hidden * h_p * h_p + h_p * out_p) * 2
    bias_bytes = (h_p + n_hidden * h_p + out_p) * 4
    tile_bytes = 2 * (tm_eff * din_p * 2 + tm_eff * out_p * 4)   # 2x double buffer
    scratch_bytes = 6 * tm_eff * h_p * 4                         # f32 intermediates
    vmem_limit = int(min(64 * 2**20,
                         max(32 * 2**20,
                             2 * (weight_bytes + bias_bytes + tile_bytes
                                  + scratch_bytes))))

    kernel = functools.partial(resfcc_kernel, n_hidden=n_hidden, mu=mu,
                               act_name=act_name)

    out_pad = pl.pallas_call(
        kernel,
        out_shape=jax.ShapeDtypeStruct((n_pad, out_p), jnp.float32),
        grid=(grid,),
        in_specs=[
            pl.BlockSpec((tm_eff, din_p), lambda i: (i, 0)),          # x tile
            pl.BlockSpec((din_p, h_p), lambda i: (0, 0)),             # w0 (resident)
            pl.BlockSpec((1, h_p), lambda i: (0, 0)),                 # b0
            pl.BlockSpec((n_hidden, h_p, h_p), lambda i: (0, 0, 0)),  # wh (resident)
            pl.BlockSpec((n_hidden, 1, h_p), lambda i: (0, 0, 0)),    # bh
            pl.BlockSpec((h_p, out_p), lambda i: (0, 0)),             # wo (resident)
            pl.BlockSpec((1, out_p), lambda i: (0, 0)),               # bo
        ],
        out_specs=pl.BlockSpec((tm_eff, out_p), lambda i: (i, 0)),
        compiler_params=pltpu.CompilerParams(
            dimension_semantics=("parallel",),   # megacore split on v7x
            vmem_limit_bytes=vmem_limit),
    )(xb, w0b, b0p, whb, bhp, wob, bop)

    return out_pad[:n, :out_size]


# --------------------------- parameter init ----------------------------------
def init_resfcc_params(key, in_size, h_size, out_size, n_hidden,
                       sigma_w, sigma_b):
    """Matches Standard_Linear.reset_parameters:
       W ~ N(0, (std_weights/sqrt(in))^2), b ~ N(0, std_bias^2).
       Weights stored transposed: (in, out)."""
    keys = jax.random.split(key, 2 * (n_hidden + 2))
    ki = iter(range(len(keys)))

    def lin(k_w, k_b, fan_in, fan_out, std_w, std_b):
        w = jax.random.normal(k_w, (fan_in, fan_out), jnp.float32) * (
            std_w / math.sqrt(fan_in))
        b = jax.random.normal(k_b, (1, fan_out), jnp.float32) * std_b
        return w, b

    # first linear: std_weights = 1.0
    w0, b0 = lin(keys[next(ki)], keys[next(ki)], in_size, h_size, 1.0, sigma_b)
    # hidden residual blocks: std_weights = sigma_w
    whs, bhs = [], []
    for _ in range(n_hidden):
        w, b = lin(keys[next(ki)], keys[next(ki)], h_size, h_size,
                   sigma_w, sigma_b)
        whs.append(w)
        bhs.append(b[None])           # (1, 1, h)
    wh = jnp.stack(whs, axis=0)        # (n_hidden, h, h)
    bh = jnp.concatenate(bhs, axis=0)  # (n_hidden, 1, h)
    # output linear: std_weights = sigma_w
    wo, bo = lin(keys[next(ki)], keys[next(ki)], h_size, out_size,
                 sigma_w, sigma_b)
    return dict(w0=w0, b0=b0, wh=wh, bh=bh, wo=wo, bo=bo)


# --------------------------- pure-JAX references ------------------------------
def resfcc_reference_f32(x, params, *, mu, act_name):
    """Exact module semantics in f32 (for loose sanity check)."""
    n = x.shape[0]
    h = x.reshape(n, -1).astype(jnp.float32)
    h = h @ params["w0"] + params["b0"]
    for i in range(params["wh"].shape[0]):
        h = mu * h + (_act(h, act_name) @ params["wh"][i] + params["bh"][i])
    h = _act(h, act_name)
    return h @ params["wo"] + params["bo"]


def resfcc_reference_bf16(x, params, *, mu, act_name):
    """Mirrors the kernel's numerics: bf16 dot operands, f32 accumulation."""
    bf, f32 = jnp.bfloat16, jnp.float32
    n = x.shape[0]
    xb = x.reshape(n, -1).astype(f32).astype(bf)
    h = jnp.dot(xb, params["w0"].astype(bf),
                preferred_element_type=f32) + params["b0"]
    for i in range(params["wh"].shape[0]):
        a = _act(h, act_name).astype(bf)
        h = mu * h + jnp.dot(a, params["wh"][i].astype(bf),
                             preferred_element_type=f32) + params["bh"][i]
    a = _act(h, act_name).astype(bf)
    return jnp.dot(a, params["wo"].astype(bf),
                   preferred_element_type=f32) + params["bo"]


# --------------------------------- main ---------------------------------------
if __name__ == "__main__":
    # Module hyper-parameters (small, consistent with ResFcc.__init__)
    N, C, H, W = 2, 4, 16, 16          # input image -> flatten gives in_size
    in_size = C * H * W                # 1024
    h_size = 32
    out_size = 8
    n_hidden = 2
    sigma_w = 1.0
    sigma_b = 0.1
    mu = 1.0
    act_name = "ReLU"                  # ResFcc also allows 'erf'/'GELU'/'Linear'

    key = jax.random.PRNGKey(0)
    kx, kp = jax.random.split(key)
    x = jax.random.normal(kx, (N, C, H, W), jnp.float32)
    params = init_resfcc_params(kp, in_size, h_size, out_size, n_hidden,
                                sigma_w, sigma_b)

    out = resfcc_forward(x, params, mu=mu, act_name=act_name)
    out = jax.block_until_ready(out)
    assert out.shape == (N, out_size)

    # Strict check vs. a reference that mirrors the kernel numerics
    # (bf16 operands, f32 accumulation).
    ref_bf16 = jax.block_until_ready(
        resfcc_reference_bf16(x, params, mu=mu, act_name=act_name))
    assert jnp.allclose(out, ref_bf16, atol=2e-3, rtol=2e-3), \
        "mismatch vs bf16-mirrored reference"

    # Loose check vs. the exact f32 module semantics (bf16 storage tolerance).
    ref_f32 = jax.block_until_ready(
        resfcc_reference_f32(x, params, mu=mu, act_name=act_name))
    assert jnp.allclose(out, ref_f32, atol=1e-1, rtol=1e-1), \
        "mismatch vs f32 reference"

    print("KERNEL_OK")
</pallas_src>

<mosaic_0001>
module attributes {stable_mosaic.version = 11 : i64} {
  func.func @resfcc_kernel(%arg0: i32, %arg1: memref<16x1024xbf16, #tpu.memory_space<vmem>>, %arg2: memref<1024x128xbf16, #tpu.memory_space<vmem>>, %arg3: memref<1x128xf32, #tpu.memory_space<vmem>>, %arg4: memref<2x128x128xbf16, #tpu.memory_space<vmem>>, %arg5: memref<2x1x128xf32, #tpu.memory_space<vmem>>, %arg6: memref<128x128xbf16, #tpu.memory_space<vmem>>, %arg7: memref<1x128xf32, #tpu.memory_space<vmem>>, %arg8: memref<16x128xf32, #tpu.memory_space<vmem>>) attributes {dimension_semantics = [#tpu.dimension_semantics<parallel>], iteration_bounds = array<i64: 1>, scalar_prefetch = 0 : i64, scratch_operands = 0 : i64, tpu.core_type = #tpu.core_type<tc>, window_params = [{transform_indices = @transform_0, window_bounds = array<i64: 16, 1024>}, {pipeline_mode = #tpu.pipeline_mode<synchronous>, transform_indices = @transform_1, window_bounds = array<i64: 1024, 128>}, {pipeline_mode = #tpu.pipeline_mode<synchronous>, transform_indices = @transform_2, window_bounds = array<i64: 1, 128>}, {pipeline_mode = #tpu.pipeline_mode<synchronous>, transform_indices = @transform_3, window_bounds = array<i64: 2, 128, 128>}, {pipeline_mode = #tpu.pipeline_mode<synchronous>, transform_indices = @transform_4, window_bounds = array<i64: 2, 1, 128>}, {pipeline_mode = #tpu.pipeline_mode<synchronous>, transform_indices = @transform_5, window_bounds = array<i64: 128, 128>}, {pipeline_mode = #tpu.pipeline_mode<synchronous>, transform_indices = @transform_6, window_bounds = array<i64: 1, 128>}, {transform_indices = @transform_7, window_bounds = array<i64: 16, 128>}]} {
    %c0 = arith.constant 0 : index
    %c0_0 = arith.constant 0 : index
    %0 = vector.load %arg1[%c0, %c0_0] : memref<16x1024xbf16, #tpu.memory_space<vmem>>, vector<16x1024xbf16>
    %c0_1 = arith.constant 0 : index
    %c0_2 = arith.constant 0 : index
    %1 = vector.load %arg2[%c0_1, %c0_2] : memref<1024x128xbf16, #tpu.memory_space<vmem>>, vector<1024x128xbf16>
    %cst = arith.constant dense<0.000000e+00> : vector<16x128xf32>
    %2 = tpu.matmul %0, %1, %cst {dimension_numbers = #tpu.dot_dimension_numbers<[1], [0], [0], [1], [0, 0, 1, 1], [], []>} : vector<16x1024xbf16>, vector<1024x128xbf16>, vector<16x128xf32> -> vector<16x128xf32>
    %c0_3 = arith.constant 0 : index
    %c0_4 = arith.constant 0 : index
    %3 = vector.load %arg3[%c0_3, %c0_4] : memref<1x128xf32, #tpu.memory_space<vmem>>, vector<1x128xf32>
    %4 = vector.broadcast %3 : vector<1x128xf32> to vector<16x128xf32>
    %5 = arith.addf %2, %4 : vector<16x128xf32>
    %cst_5 = arith.constant 0.000000e+00 : f32
    %6 = vector.broadcast %cst_5 : f32 to vector<16x128xf32>
    %7 = arith.maximumf %5, %6 : vector<16x128xf32>
    %8 = arith.truncf %7 : vector<16x128xf32> to vector<16x128xbf16>
    %c0_6 = arith.constant 0 : index
    %c0_7 = arith.constant 0 : index
    %c0_8 = arith.constant 0 : index
    %9 = vector.load %arg4[%c0_6, %c0_7, %c0_8] : memref<2x128x128xbf16, #tpu.memory_space<vmem>>, vector<1x128x128xbf16>
    %10 = vector.shape_cast %9 : vector<1x128x128xbf16> to vector<128x128xbf16>
    %cst_9 = arith.constant dense<0.000000e+00> : vector<16x128xf32>
    %11 = tpu.matmul %8, %10, %cst_9 {dimension_numbers = #tpu.dot_dimension_numbers<[1], [0], [0], [1], [0, 0, 1, 1], [], []>} : vector<16x128xbf16>, vector<128x128xbf16>, vector<16x128xf32> -> vector<16x128xf32>
    %12 = arith.addf %5, %11 : vector<16x128xf32>
    %c0_10 = arith.constant 0 : index
    %c0_11 = arith.constant 0 : index
    %c0_12 = arith.constant 0 : index
    %13 = vector.load %arg5[%c0_10, %c0_11, %c0_12] : memref<2x1x128xf32, #tpu.memory_space<vmem>>, vector<1x1x128xf32>
    %14 = vector.shape_cast %13 : vector<1x1x128xf32> to vector<1x128xf32>
    %15 = vector.broadcast %14 : vector<1x128xf32> to vector<16x128xf32>
    %16 = arith.addf %12, %15 : vector<16x128xf32>
    %cst_13 = arith.constant 0.000000e+00 : f32
    %17 = vector.broadcast %cst_13 : f32 to vector<16x128xf32>
    %18 = arith.maximumf %16, %17 : vector<16x128xf32>
    %19 = arith.truncf %18 : vector<16x128xf32> to vector<16x128xbf16>
    %c1 = arith.constant 1 : index
    %c0_14 = arith.constant 0 : index
    %c0_15 = arith.constant 0 : index
    %20 = vector.load %arg4[%c1, %c0_14, %c0_15] : memref<2x128x128xbf16, #tpu.memory_space<vmem>>, vector<1x128x128xbf16>
    %21 = vector.shape_cast %20 : vector<1x128x128xbf16> to vector<128x128xbf16>
    %cst_16 = arith.constant dense<0.000000e+00> : vector<16x128xf32>
    %22 = tpu.matmul %19, %21, %cst_16 {dimension_numbers = #tpu.dot_dimension_numbers<[1], [0], [0], [1], [0, 0, 1, 1], [], []>} : vector<16x128xbf16>, vector<128x128xbf16>, vector<16x128xf32> -> vector<16x128xf32>
    %23 = arith.addf %16, %22 : vector<16x128xf32>
    %c1_17 = arith.constant 1 : index
    %c0_18 = arith.constant 0 : index
    %c0_19 = arith.constant 0 : index
    %24 = vector.load %arg5[%c1_17, %c0_18, %c0_19] : memref<2x1x128xf32, #tpu.memory_space<vmem>>, vector<1x1x128xf32>
    %25 = vector.shape_cast %24 : vector<1x1x128xf32> to vector<1x128xf32>
    %26 = vector.broadcast %25 : vector<1x128xf32> to vector<16x128xf32>
    %27 = arith.addf %23, %26 : vector<16x128xf32>
    %cst_20 = arith.constant 0.000000e+00 : f32
    %28 = vector.broadcast %cst_20 : f32 to vector<16x128xf32>
    %29 = arith.maximumf %27, %28 : vector<16x128xf32>
    %30 = arith.truncf %29 : vector<16x128xf32> to vector<16x128xbf16>
    %c0_21 = arith.constant 0 : index
    %c0_22 = arith.constant 0 : index
    %31 = vector.load %arg6[%c0_21, %c0_22] : memref<128x128xbf16, #tpu.memory_space<vmem>>, vector<128x128xbf16>
    %cst_23 = arith.constant dense<0.000000e+00> : vector<16x128xf32>
    %32 = tpu.matmul %30, %31, %cst_23 {dimension_numbers = #tpu.dot_dimension_numbers<[1], [0], [0], [1], [0, 0, 1, 1], [], []>} : vector<16x128xbf16>, vector<128x128xbf16>, vector<16x128xf32> -> vector<16x128xf32>
    %c0_24 = arith.constant 0 : index
    %c0_25 = arith.constant 0 : index
    %33 = vector.load %arg7[%c0_24, %c0_25] : memref<1x128xf32, #tpu.memory_space<vmem>>, vector<1x128xf32>
    %34 = vector.broadcast %33 : vector<1x128xf32> to vector<16x128xf32>
    %35 = arith.addf %32, %34 : vector<16x128xf32>
    %c0_26 = arith.constant 0 : index
    %c0_27 = arith.constant 0 : index
    %36 = vector.load %arg8[%c0_26, %c0_27] : memref<16x128xf32, #tpu.memory_space<vmem>>, vector<16x128xf32>
    tpu.vector_store %arg8[%c0_26, %c0_27], %35 {strides = array<i32>} : memref<16x128xf32, #tpu.memory_space<vmem>>, vector<16x128xf32>,
    return
  }
  func.func @transform_0(%arg0: i32) -> (i32, i32) {
    %c0_i32 = arith.constant 0 : i32
    %c0_i32_0 = arith.constant 0 : i32
    return %arg0, %c0_i32 : i32, i32
  }
  func.func @transform_1(%arg0: i32) -> (i32, i32) {
    %c0_i32 = arith.constant 0 : i32
    %c0_i32_0 = arith.constant 0 : i32
    %c0_i32_1 = arith.constant 0 : i32
    return %c0_i32, %c0_i32_0 : i32, i32
  }
  func.func @transform_2(%arg0: i32) -> (i32, i32) {
    %c0_i32 = arith.constant 0 : i32
    %c0_i32_0 = arith.constant 0 : i32
    %c0_i32_1 = arith.constant 0 : i32
    return %c0_i32, %c0_i32_0 : i32, i32
  }
  func.func @transform_3(%arg0: i32) -> (i32, i32, i32) {
    %c0_i32 = arith.constant 0 : i32
    %c0_i32_0 = arith.constant 0 : i32
    %c0_i32_1 = arith.constant 0 : i32
    %c0_i32_2 = arith.constant 0 : i32
    return %c0_i32, %c0_i32_0, %c0_i32_1 : i32, i32, i32
  }
  func.func @transform_4(%arg0: i32) -> (i32, i32, i32) {
    %c0_i32 = arith.constant 0 : i32
    %c0_i32_0 = arith.constant 0 : i32
    %c0_i32_1 = arith.constant 0 : i32
    %c0_i32_2 = arith.constant 0 : i32
    return %c0_i32, %c0_i32_0, %c0_i32_1 : i32, i32, i32
  }
  func.func @transform_5(%arg0: i32) -> (i32, i32) {
    %c0_i32 = arith.constant 0 : i32
    %c0_i32_0 = arith.constant 0 : i32
    %c0_i32_1 = arith.constant 0 : i32
    return %c0_i32, %c0_i32_0 : i32, i32
  }
  func.func @transform_6(%arg0: i32) -> (i32, i32) {
    %c0_i32 = arith.constant 0 : i32
    %c0_i32_0 = arith.constant 0 : i32
    %c0_i32_1 = arith.constant 0 : i32
    return %c0_i32, %c0_i32_0 : i32, i32
  }
  func.func @transform_7(%arg0: i32) -> (i32, i32) {
    %c0_i32 = arith.constant 0 : i32
    %c0_i32_0 = arith.constant 0 : i32
    return %arg0, %c0_i32 : i32, i32
  }
}

</mosaic_0001>

<bundles_post_ra>
// kernel: tpu_custom_call.1
= control target key start
LH: loop header
LB: loop body
LE: loop exit
PB: predicated region body
PF: predicated region fallthrough
CT: control target
= control target key end

     0   :  { %12 = vsyncpa [#allocation3], 0  ;;  %s1794_s0 = inlined_call_operand.hbm [shape: bf16[16,1024], index: 0, kind: input, shape index: {}]   ;;  %s1795_s1 = inlined_call_operand.hbm [shape: bf16[1024,128], index: 1, kind: input, shape index: {}]   ;;  %s1796_s2 = inlined_call_operand.vmem [shape: f32[1,128], index: 2, kind: input, shape index: {}]   ;;  %s1797_s3 = inlined_call_operand.hbm [shape: bf16[2,128,128], index: 3, kind: input, shape index: {}]   ;;  %s1798_s4 = inlined_call_operand.vmem [shape: f32[2,1,128], index: 4, kind: input, shape index: {}]   ;;  %s1799_s5 = inlined_call_operand.hbm [shape: bf16[128,128], index: 5, kind: input, shape index: {}]   ;;  %s1800_s6 = inlined_call_operand.vmem [shape: f32[1,128], index: 6, kind: input, shape index: {}]   ;;  %s1801_s7 = inlined_call_operand.hbm [shape: f32[16,128], index: 7, kind: output, shape index: {}]  }
   0x1   :  { %13 = vsyncpa [#allocation6], 0 }
   0x2   :  { %14 = vsyncpa [#allocation9], 0 }
   0x3   :  { %15 = vsyncpa [#allocation4], 0  ;;  %s1675_s24 = smov [#allocation5]  }
   0x4   :  { %s33_s25 = sshll.u32 %s1675_s24, 4  ;;  %s34_s25 = int_to_ptr.vmem [resolvable:$true] %s33_s25 }
   0x5   :  { %s1575_s26 = scalar_lea.vmem %s34_s25, 8192  ;;  %p1580_p1 = scmp.lt.s32.totalorder %s34_s25, %s34_s25 }
   0x6   :  { %p1576_p0 = scmp.ne.s32.totalorder %s34_s25, %s1575_s26  ;;  %p1581_p2 = scmp.lt.s32.totalorder %s1575_s26, %s1575_s26 }
   0x8   :  { %p1582_p3 = por %p1581_p2, %p1580_p1 }
   0xa   :  { %p1583_p4 = pnand %p1582_p3, %p1576_p0 }
   0xc   :  { %1586 = shalt.err (!%p1583_p4)
}
   0xd   :  { %s1676_s27 = smov 64   ;;  %s1677_s28 = smov 4  }
   0xe   :  { %39 = dma.hbm_to_vmem [thread:$0]  %s1795_s1, 8192, %s34_s25, [#allocation6], %s1676_s27, %s1676_s27, %s1677_s28  }
   0xf   :  { %s1678_s8 = smov [#allocation2]  }
  0x10   :  { %s21_s9 = sshll.u32 %s1678_s8, 4  ;;  %s22_s9 = int_to_ptr.vmem [resolvable:$true] %s21_s9 }
  0x11   :  { %s1595_s10 = scalar_lea.vmem %s22_s9, 1024  ;;  %p1600_p6 = scmp.lt.s32.totalorder %s22_s9, %s22_s9 }
  0x12   :  { %p1596_p5 = scmp.ne.s32.totalorder %s22_s9, %s1595_s10  ;;  %p1601_p7 = scmp.lt.s32.totalorder %s1595_s10, %s1595_s10 }
  0x14   :  { %p1602_p8 = por %p1601_p7, %p1600_p6 }
  0x16   :  { %p1603_p9 = pnand %p1602_p8, %p1596_p5 }
  0x18   :  { %1606 = shalt.err (!%p1603_p9)
}
  0x19   :  { %s1679_s11 = smov 512   ;;  %s1680_s12 = smov 32  }
  0x1a   :  { %27 = dma.hbm_to_vmem [thread:$0]  %s1794_s0, 1024, %s22_s9, [#allocation3], %s1679_s11, %s1679_s11, %s1680_s12  }
  0x1b   :  { %s1681_s15 = smov [#allocation7]   ;;  %s1682_s17 = smov [#allocation8]  }
  0x1c   :  { %s47_s16 = sshll.u32 %s1681_s15, 4  ;;  %s61_s1 = sshll.u32 %s1682_s17, 4  ;;  %s48_s16 = int_to_ptr.vmem [resolvable:$true] %s47_s16  ;;  %s62_s1 = int_to_ptr.vmem [resolvable:$true] %s61_s1 }
  0x1d   :  { %s1615_s18 = scalar_lea.vmem %s48_s16, 2048  ;;  %p1620_p11 = scmp.lt.s32.totalorder %s48_s16, %s48_s16 }
  0x1e   :  { %p1616_p10 = scmp.ne.s32.totalorder %s48_s16, %s1615_s18  ;;  %p1621_p12 = scmp.lt.s32.totalorder %s1615_s18, %s1615_s18 }
  0x20   :  { %p1622_p13 = por %p1621_p12, %p1620_p11 }
  0x22   :  { %p1623_p0 = pnand %p1622_p13, %p1616_p10 }
  0x24   :  { %1626 = shalt.err (!%p1623_p0)
}
  0x25   :  { %53 = dma.hbm_to_vmem [thread:$0]  %s1797_s3, 2048, %s48_s16, [#allocation6], %s1676_s27, %s1676_s27, %s1677_s28  }
  0x26   :  { %s1635_s0 = scalar_lea.vmem %s62_s1, 1024  ;;  %p1640_p2 = scmp.lt.s32.totalorder %s62_s1, %s62_s1 }
  0x27   :  { %p1636_p1 = scmp.ne.s32.totalorder %s62_s1, %s1635_s0  ;;  %p1641_p3 = scmp.lt.s32.totalorder %s1635_s0, %s1635_s0 }
  0x29   :  { %p1642_p4 = por %p1641_p3, %p1640_p2 }
  0x2b   :  { %p1643_p5 = pnand %p1642_p4, %p1636_p1 }
  0x2d   :  { %1646 = shalt.err (!%p1643_p5)
}
  0x2e   :  { %67 = dma.hbm_to_vmem [thread:$0]  %s1799_s5, 1024, %s62_s1, [#allocation9], %s1676_s27, %s1676_s27, %s1677_s28  }
  0x2f   :  { %1667 = dma.done.wait [#allocation3], 1024  }
  0x30   :  { %1668 = vsyncadd [#allocation3], 4294966272 }
  0x31   :  { %1669 = dma.done.wait [#allocation6], 10240  }
  0x32   :  { %1670 = vsyncadd [#allocation6], 4294957056 }
  0x33   :  { %1671 = dma.done.wait [#allocation9], 1024  }
  0x34   :  { %1672 = vsyncadd [#allocation9], 4294966272  ;;  %v1479_v0 = vld [vmem:[#allocation5 + $0x78] sm:$0xff]   ;;  %v1483_v4 = vld [vmem:[#allocation5 + $0x70] sm:$0xff]   ;;  %vm1684_vm0 = vmmov 0   ;;  %s1685_s28 = smov [#allocation10]  }
  0x35   :  { %v1480_v1 = vld [vmem:[#allocation5 + $0xf8] sm:$0xff]   ;;  %1291 = vmatprep.subr.bf16.mxu0 %v1479_v0  ;;  %v1484_v5 = vld [vmem:[#allocation5 + $0xf0] sm:$0xff]   ;;  %v1487_v8 = vld [vmem:[#allocation5 + $0x68] sm:$0xff]   ;;  %s1176_s29 = sshll.u32 %s1685_s28, 4  ;;  %s1177_s29 = int_to_ptr.vmem [resolvable:$true] %s1176_s29 }
  0x36   :  { %v1481_v2 = vld [vmem:[#allocation5 + $0x38] sm:$0xff]   ;;  %1313 = vmatprep.subr.bf16.mxu1 %v1480_v1  ;;  %v1485_v6 = vld [vmem:[#allocation5 + $0x30] sm:$0xff]   ;;  %v1488_v9 = vld [vmem:[#allocation5 + $0xe8] sm:$0xff]   ;;  %p1652_p7 = scmp.lt.s32.totalorder %s1177_s29, %s1177_s29 }
  0x37   :  { %v1482_v3 = vld [vmem:[#allocation5 + $0xb8] sm:$0xff]   ;;  %1292 = vmatpush3.bf16.msra.mxu0 %v1481_v2  ;;  %v1486_v7 = vld [vmem:[#allocation5 + $0xb0] sm:$0xff]   ;;  %v1489_v10 = vld [vmem:[#allocation5 + $0x28] sm:$0xff]  }
  0x38   :  { %1314 = vmatpush3.bf16.msra.mxu1 %v1482_v3  ;;  %1293 = vmatprep.subr.bf16.mxu0 %v1483_v4  ;;  %v1490_v11 = vld [vmem:[#allocation5 + $0xa8] sm:$0xff]   ;;  %v1491_v12 = vld [vmem:[#allocation5 + $0x60] sm:$0xff]   ;;  %v1495_v16 = vld [vmem:[#allocation5 + $0x58] sm:$0xff]  }
  0x39   :  { %1315 = vmatprep.subr.bf16.mxu1 %v1484_v5  ;;  %v1492_v13 = vld [vmem:[#allocation5 + $0xe0] sm:$0xff]   ;;  %v1496_v17 = vld [vmem:[#allocation5 + $0xd8] sm:$0xff]   ;;  %v1499_v20 = vld [vmem:[#allocation5 + $0x50] sm:$0xff]  }
  0x3a   :  { %v1493_v14 = vld [vmem:[#allocation5 + $0x20] sm:$0xff]   ;;  %v1497_v18 = vld [vmem:[#allocation5 + $0x18] sm:$0xff]   ;;  %v1500_v21 = vld [vmem:[#allocation5 + $0xd0] sm:$0xff]  }
  0x3b   :  { %1294 = vmatpush3.bf16.msra.mxu0 %v1485_v6  ;;  %v1494_v15 = vld [vmem:[#allocation5 + $0xa0] sm:$0xff]   ;;  %v1498_v19 = vld [vmem:[#allocation5 + $0x98] sm:$0xff]   ;;  %v1501_v22 = vld [vmem:[#allocation5 + $0x10] sm:$0xff]  }
  0x3c   :  { %1316 = vmatpush3.bf16.msra.mxu1 %v1486_v7  ;;  %1295 = vmatprep.subr.bf16.mxu0 %v1487_v8  ;;  %v1502_v23 = vld [vmem:[#allocation5 + $0x90] sm:$0xff]   ;;  %v1503_v24 = vld [vmem:[#allocation5 + $0x48] sm:$0xff]   ;;  %v1507_v28 = vld [vmem:[#allocation5 + $0x40] sm:$0xff]  }
  0x3d   :  { %1317 = vmatprep.subr.bf16.mxu1 %v1488_v9  ;;  %v1504_v25 = vld [vmem:[#allocation5 + $0xc8] sm:$0xff]   ;;  %v1508_v29 = vld [vmem:[#allocation5 + $0xc0] sm:$0xff]   ;;  %v1511_v40 = vld [vmem:[#allocation5 + $0x178] sm:$0xff]  }
  0x3e   :  { %v1505_v26 = vld [vmem:[#allocation5 + $0x8] sm:$0xff]   ;;  %v1509_v30 = vld [vmem:[#allocation5] sm:$0xff]   ;;  %v1512_v41 = vld [vmem:[#allocation5 + $0x1f8] sm:$0xff]  }
  0x3f   :  { %1296 = vmatpush3.bf16.msra.mxu0 %v1489_v10  ;;  %v1506_v27 = vld [vmem:[#allocation5 + $0x88] sm:$0xff]   ;;  %v1510_v31 = vld [vmem:[#allocation5 + $0x80] sm:$0xff]   ;;  %v1513_v42 = vld [vmem:[#allocation5 + $0x138] sm:$0xff]  }
  0x40   :  { %1318 = vmatpush3.bf16.msra.mxu1 %v1490_v11  ;;  %1297 = vmatprep.subr.bf16.mxu0 %v1491_v12  ;;  %v83_v32 = vld [vmem:[#allocation2] sm:$0xff]  ;;  %v84_v34 = vld [vmem:[#allocation2 + $0x8] sm:$0xff]  ;;  %v1514_v43 = vld [vmem:[#allocation5 + $0x1b8] sm:$0xff]  }
  0x41   :  { %1319 = vmatprep.subr.bf16.mxu1 %v1492_v13  ;;  %v87_v33 = vld [vmem:[#allocation2 + $0x20] sm:$0xff]  ;;  %v88_v37 = vld [vmem:[#allocation2 + $0x28] sm:$0xff]  ;;  %v1515_v44 = vld [vmem:[#allocation5 + $0x170] sm:$0xff]  }
  0x42   :  { %v1191_v35 = vcombine.low %v83_v32, %v87_v33  ;;  %v1192_v36 = vcombine.high %v83_v32, %v87_v33  ;;  %v1193_v38 = vcombine.low %v84_v34, %v88_v37  ;;  %v1194_v39 = vcombine.high %v84_v34, %v88_v37  ;;  %v1516_v45 = vld [vmem:[#allocation5 + $0x1f0] sm:$0xff]   ;;  %v1519_v48 = vld [vmem:[#allocation5 + $0x168] sm:$0xff]   ;;  %v1523_v52 = vld [vmem:[#allocation5 + $0x160] sm:$0xff]  }
  0x43   :  { %1298 = vmatpush3.bf16.msra.mxu0 %v1493_v14  ;;  %v1517_v46 = vld [vmem:[#allocation5 + $0x130] sm:$0xff]   ;;  %v1520_v49 = vld [vmem:[#allocation5 + $0x1e8] sm:$0xff]   ;;  %v1524_v53 = vld [vmem:[#allocation5 + $0x1e0] sm:$0xff]  }
  0x44   :  { %1320 = vmatpush3.bf16.msra.mxu1 %v1494_v15  ;;  %1299 = vmatprep.subr.bf16.mxu0 %v1495_v16  ;;  %v1518_v47 = vld [vmem:[#allocation5 + $0x1b0] sm:$0xff]   ;;  %v1521_v50 = vld [vmem:[#allocation5 + $0x128] sm:$0xff]   ;;  %v1525_v54 = vld [vmem:[#allocation5 + $0x120] sm:$0xff]  }
  0x45   :  { %1321 = vmatprep.subr.bf16.mxu1 %v1496_v17  ;;  %682 = vmatprep.mubr.bf16.mxu0 %v1192_v36  ;;  %v1522_v51 = vld [vmem:[#allocation5 + $0x1a8] sm:$0xff]   ;;  %v1526_v55 = vld [vmem:[#allocation5 + $0x1a0] sm:$0xff]   ;;  %v1527_v56 = vld [vmem:[#allocation5 + $0x158] sm:$0xff]   ;;  %v1683_v17 = vmov 0.0  }
  0x46   :  { %723 = vmatprep.mubr.bf16.mxu1 %v1194_v39  ;;  %v1528_v57 = vld [vmem:[#allocation5 + $0x1d8] sm:$0xff]   ;;  %v1531_v60 = vld [vmem:[#allocation5 + $0x150] sm:$0xff]   ;;  %v1535_v0 = vld [vmem:[#allocation5 + $0x148] sm:$0xff]  }
  0x47   :  { %1300 = vmatpush3.bf16.msra.mxu0 %v1497_v18  ;;  %v1529_v58 = vld [vmem:[#allocation5 + $0x118] sm:$0xff]   ;;  %v1532_v61 = vld [vmem:[#allocation5 + $0x1d0] sm:$0xff]   ;;  %v1536_v1 = vld [vmem:[#allocation5 + $0x1c8] sm:$0xff]  }
  0x48   :  { %1322 = vmatpush3.bf16.msra.mxu1 %v1498_v19  ;;  %1301 = vmatprep.subr.bf16.mxu0 %v1499_v20  ;;  %v1530_v59 = vld [vmem:[#allocation5 + $0x198] sm:$0xff]   ;;  %v1533_v62 = vld [vmem:[#allocation5 + $0x110] sm:$0xff]   ;;  %v1537_v2 = vld [vmem:[#allocation5 + $0x108] sm:$0xff]  }
  0x49   :  { %1323 = vmatprep.subr.bf16.mxu1 %v1500_v21  ;;  %v1534_v63 = vld [vmem:[#allocation5 + $0x190] sm:$0xff]   ;;  %v1538_v3 = vld [vmem:[#allocation5 + $0x188] sm:$0xff]   ;;  %v1539_v4 = vld [vmem:[#allocation5 + $0x140] sm:$0xff]  }
  0x4a   :  { %v1540_v5 = vld [vmem:[#allocation5 + $0x1c0] sm:$0xff]   ;;  %v85_v8 = vld [vmem:[#allocation2 + $0x10] sm:$0xff]  ;;  %v86_v12 = vld [vmem:[#allocation2 + $0x18] sm:$0xff] }
  0x4b   :  { %1302 = vmatpush3.bf16.msra.mxu0 %v1501_v22  ;;  %v1541_v6 = vld [vmem:[#allocation5 + $0x100] sm:$0xff]   ;;  %v89_v9 = vld [vmem:[#allocation2 + $0x30] sm:$0xff]  ;;  %v90_v13 = vld [vmem:[#allocation2 + $0x38] sm:$0xff] }
  0x4c   :  { %1324 = vmatpush3.bf16.msra.mxu1 %v1502_v23  ;;  %1303 = vmatprep.subr.bf16.mxu0 %v1503_v24  ;;  %v1542_v7 = vld [vmem:[#allocation5 + $0x180] sm:$0xff]   ;;  %v1195_v10 = vcombine.low %v85_v8, %v89_v9  ;;  %v1196_v11 = vcombine.high %v85_v8, %v89_v9  ;;  %v1197_v14 = vcombine.low %v86_v12, %v90_v13  ;;  %v1543_v16 = vld [vmem:[#allocation7 + $0x38] sm:$0xff]   ;;  %v1544_v18 = vld [vmem:[#allocation7 + $0x30] sm:$0xff]  }
  0x4d   :  { %1325 = vmatprep.subr.bf16.mxu1 %v1504_v25  ;;  %v1198_v15 = vcombine.high %v86_v12, %v90_v13  ;;  %v1545_v19 = vld [vmem:[#allocation7 + $0x28] sm:$0xff]   ;;  %v1546_v20 = vld [vmem:[#allocation7 + $0x20] sm:$0xff]   ;;  %v1547_v21 = vld [vmem:[#allocation7 + $0x18] sm:$0xff]  }
  0x4e   :  { %v1548_v22 = vld [vmem:[#allocation7 + $0x10] sm:$0xff]   ;;  %v1549_v23 = vld [vmem:[#allocation7 + $0x8] sm:$0xff]   ;;  %v1550_v24 = vld [vmem:[#allocation7] sm:$0xff]  }
  0x4f   :  { %1304 = vmatpush3.bf16.msra.mxu0 %v1505_v26  ;;  %v1551_v25 = vld [vmem:[#allocation7 + $0x78] sm:$0xff]   ;;  %v1552_v26 = vld [vmem:[#allocation7 + $0x70] sm:$0xff]   ;;  %v1190_v37 = vld [vmem:[%s1796_s2] ss:$0 sm:$0xff] }
  0x50   :  { %1326 = vmatpush3.bf16.msra.mxu1 %v1506_v27  ;;  %1305 = vmatprep.subr.bf16.mxu0 %v1507_v28  ;;  %v1553_v27 = vld [vmem:[#allocation7 + $0x68] sm:$0xff]   ;;  %v1554_v28 = vld [vmem:[#allocation7 + $0x60] sm:$0xff]   ;;  %v1563_v9 = vld [vmem:[#allocation8 + $0x18] sm:$0xff]  }
  0x51   :  { %1327 = vmatprep.subr.bf16.mxu1 %v1508_v29  ;;  %v1555_v29 = vld [vmem:[#allocation7 + $0x58] sm:$0xff]   ;;  %v1562_v8 = vld [vmem:[#allocation8 + $0x20] sm:$0xff]  }
  0x52   :  { %v1271_v12 = vld [vmem:[%s1798_s4] ss:$0 sm:$0xff] }
  0x53   :  { %1306 = vmatpush3.bf16.msra.mxu0 %v1509_v30 }
  0x54   :  { %1328 = vmatpush3.bf16.msra.mxu1 %v1510_v31  ;;  %1335 = vmatprep.subr.bf16.mxu0 %v1511_v40 }
  0x55   :  { %1357 = vmatprep.subr.bf16.mxu1 %v1512_v41 }
  0x56   :  { %683 = vmatmul.mubr.bf16.vlgmr.msra.gmra.mxu0 %v1191_v35 }
  0x57   :  { %724 = vmatmul.mubr.bf16.vlgmr.msra.gmra.mxu1 %v1193_v38  ;;  %1336 = vmatpush3.bf16.msra.mxu0 %v1513_v42 }
  0x58   :  { %1358 = vmatpush3.bf16.msra.mxu1 %v1514_v43  ;;  %1337 = vmatprep.subr.bf16.mxu0 %v1515_v44 }
  0x59   :  { %1359 = vmatprep.subr.bf16.mxu1 %v1516_v45  ;;  %764 = vmatprep.mubr.bf16.mxu0 %v1196_v11 }
  0x5a   :  { %805 = vmatprep.mubr.bf16.mxu1 %v1198_v15 }
  0x5b   :  { %1338 = vmatpush3.bf16.msra.mxu0 %v1517_v46 }
  0x5c   :  { %1360 = vmatpush3.bf16.msra.mxu1 %v1518_v47  ;;  %1339 = vmatprep.subr.bf16.mxu0 %v1519_v48 }
  0x5d   :  { %1361 = vmatprep.subr.bf16.mxu1 %v1520_v49 }
  0x5f   :  { %1340 = vmatpush3.bf16.msra.mxu0 %v1521_v50 }
  0x60   :  { %1362 = vmatpush3.bf16.msra.mxu1 %v1522_v51  ;;  %1341 = vmatprep.subr.bf16.mxu0 %v1523_v52 }
  0x61   :  { %1363 = vmatprep.subr.bf16.mxu1 %v1524_v53 }
  0x63   :  { %1342 = vmatpush3.bf16.msra.mxu0 %v1525_v54 }
  0x64   :  { %1364 = vmatpush3.bf16.msra.mxu1 %v1526_v55  ;;  %1343 = vmatprep.subr.bf16.mxu0 %v1527_v56 }
  0x65   :  { %1365 = vmatprep.subr.bf16.mxu1 %v1528_v57 }
  0x67   :  { %1344 = vmatpush3.bf16.msra.mxu0 %v1529_v58 }
  0x68   :  { %1366 = vmatpush3.bf16.msra.mxu1 %v1530_v59  ;;  %1345 = vmatprep.subr.bf16.mxu0 %v1531_v60 }
  0x69   :  { %1367 = vmatprep.subr.bf16.mxu1 %v1532_v61 }
  0x6b   :  { %1346 = vmatpush3.bf16.msra.mxu0 %v1533_v62 }
  0x6c   :  { %1368 = vmatpush3.bf16.msra.mxu1 %v1534_v63  ;;  %1347 = vmatprep.subr.bf16.mxu0 %v1535_v0 }
  0x6d   :  { %1369 = vmatprep.subr.bf16.mxu1 %v1536_v1 }
  0x6f   :  { %1348 = vmatpush3.bf16.msra.mxu0 %v1537_v2  ;;  %v1556_v2 = vld [vmem:[#allocation7 + $0x50] sm:$0xff]  }
  0x70   :  { %1370 = vmatpush3.bf16.msra.mxu1 %v1538_v3  ;;  %1349 = vmatprep.subr.bf16.mxu0 %v1539_v4  ;;  %v1557_v3 = vld [vmem:[#allocation7 + $0x48] sm:$0xff]   ;;  %v1558_v4 = vld [vmem:[#allocation7 + $0x40] sm:$0xff]  }
  0x71   :  { %1371 = vmatprep.subr.bf16.mxu1 %v1540_v5  ;;  %v1559_v5 = vld [vmem:[#allocation8 + $0x38] sm:$0xff]  }
  0x73   :  { %1350 = vmatpush3.bf16.msra.mxu0 %v1541_v6  ;;  %v1560_v6 = vld [vmem:[#allocation8 + $0x30] sm:$0xff]  }
  0x74   :  { %1372 = vmatpush3.bf16.msra.mxu1 %v1542_v7  ;;  %1406 = vmatprep.subr.bf16.mxu0 %v1683_v17  ;;  %v1561_v7 = vld [vmem:[#allocation8 + $0x28] sm:$0xff]  }
  0x75   :  { %1426 = vmatprep.subr.bf16.mxu1 %v1683_v17 }
  0x76   :  { %765 = vmatmul.mubr.bf16.vlgmr.msra.gmra.mxu0 %v1195_v10 }
  0x77   :  { %806 = vmatmul.mubr.bf16.vlgmr.msra.gmra.mxu1 %v1197_v14  ;;  %1407 = vmatpush3.bf16.msra.mxu0 %v1543_v16 }
  0x78   :  { %1408 = vmatprep.subr.bf16.mxu0 %v1683_v17  ;;  %1422 = vmatprep.mubr.msk.bf16.mxu0 %vm1684_vm0, %v1683_v17 }
  0x79   :  { %1442 = vmatprep.mubr.msk.bf16.mxu1 %vm1684_vm0, %v1683_v17  ;;  %1427 = vmatpush3.bf16.msra.mxu1 %v1551_v25  ;;  %v1566_v25 = vld [vmem:[#allocation8] sm:$0xff]  }
  0x7a   :  { %1428 = vmatprep.subr.bf16.mxu1 %v1683_v17 }
  0x7b   :  { %1409 = vmatpush3.bf16.msra.mxu0 %v1544_v18 }
  0x7c   :  { %1410 = vmatprep.subr.bf16.mxu0 %v1683_v17 }
  0x7d   :  { %1429 = vmatpush3.bf16.msra.mxu1 %v1552_v26 }
  0x7e   :  { %1430 = vmatprep.subr.bf16.mxu1 %v1683_v17 }
  0x7f   :  { %1411 = vmatpush3.bf16.msra.mxu0 %v1545_v19 }
  0x80   :  { %1412 = vmatprep.subr.bf16.mxu0 %v1683_v17 }
  0x81   :  { %1431 = vmatpush3.bf16.msra.mxu1 %v1553_v27 }
  0x82   :  { %1432 = vmatprep.subr.bf16.mxu1 %v1683_v17 }
  0x83   :  { %1413 = vmatpush3.bf16.msra.mxu0 %v1546_v20 }
  0x84   :  { %1414 = vmatprep.subr.bf16.mxu0 %v1683_v17 }
  0x85   :  { %1433 = vmatpush3.bf16.msra.mxu1 %v1554_v28  ;;  %v1281_v28 = vld [vmem:[%s1798_s4 + $0x1] ss:$0 sm:$0xff]  ;;  %s1647_s4 = scalar_lea.vmem %s1177_s29, 256 }
  0x86   :  { %1434 = vmatprep.subr.bf16.mxu1 %v1683_v17  ;;  %p1648_p6 = scmp.ne.s32.totalorder %s1177_s29, %s1647_s4  ;;  %p1653_p8 = scmp.lt.s32.totalorder %s1647_s4, %s1647_s4 }
  0x87   :  { %1415 = vmatpush3.bf16.msra.mxu0 %v1547_v21 }
  0x88   :  { %1416 = vmatprep.subr.bf16.mxu0 %v1683_v17  ;;  %p1654_p9 = por %p1653_p8, %p1652_p7 }
  0x89   :  { %1435 = vmatpush3.bf16.msra.mxu1 %v1555_v29 }
  0x8a   :  { %1436 = vmatprep.subr.bf16.mxu1 %v1683_v17  ;;  %p1655_p10 = pnand %p1654_p9, %p1648_p6 }
  0x8b   :  { %1417 = vmatpush3.bf16.msra.mxu0 %v1548_v22 }
  0x8c   :  { %1418 = vmatprep.subr.bf16.mxu0 %v1683_v17 }
  0x8d   :  { %1437 = vmatpush3.bf16.msra.mxu1 %v1556_v2 }
  0x8e   :  { %1438 = vmatprep.subr.bf16.mxu1 %v1683_v17 }
  0x8f   :  { %1419 = vmatpush3.bf16.msra.mxu0 %v1549_v23  ;;  %v1564_v23 = vld [vmem:[#allocation8 + $0x10] sm:$0xff]  }
  0x90   :  { %1420 = vmatprep.subr.bf16.mxu0 %v1683_v17 }
  0x91   :  { %1439 = vmatpush3.bf16.msra.mxu1 %v1557_v3 }
  0x92   :  { %1440 = vmatprep.subr.bf16.mxu1 %v1683_v17 }
  0x93   :  { %1421 = vmatpush3.bf16.msra.mxu0 %v1550_v24  ;;  %v1565_v24 = vld [vmem:[#allocation8 + $0x8] sm:$0xff]  }
  0x94   :  { %1446 = vmatprep.subr.bf16.mxu0 %v1683_v17 }
  0x95   :  { %1441 = vmatpush3.bf16.msra.mxu1 %v1558_v4 }
 0x116   :  { %v1307_v30 = vpop.f32.mrf.mxu0 }
 0x117   :  { %v1329_v31 = vpop.f32.mrf.mxu1 }
 0x118   :  { %v1308_v32 = vpop.f32.mrf.mxu0 }
 0x119   :  { %v1330_v33 = vpop.f32.mrf.mxu1  ;;  %v1309_v35 = vadd.f32 %v1308_v32, %v1307_v30 }
 0x11a   :  { %v1310_v34 = vpop.f32.mrf.mxu0  ;;  %v1331_v40 = vadd.f32 %v1330_v33, %v1329_v31 }
 0x11b   :  { %v1332_v36 = vpop.f32.mrf.mxu1  ;;  %v685_v39 = vadd.f32 %v1309_v35, %v1190_v37 }
 0x11c   :  { %v1311_v38 = vpop.f32.mrf.mxu0 }
 0x11d   :  { %v1312_v41 = vadd.f32 %v1311_v38, %v1310_v34  ;;  %v1333_v42 = vpop.f32.mrf.mxu1  ;;  %v726_v46 = vadd.f32 %v1331_v40, %v685_v39 }
 0x11e   :  { %v1334_v51 = vadd.f32 %v1333_v42, %v1332_v36 }
 0x11f   :  { %v688_v47 = vadd.f32 %v1312_v41, %v1190_v37 }
 0x121   :  { %v729_v55 = vadd.f32 %v1334_v51, %v688_v47 }
 0x136   :  { %v1351_v43 = vpop.f32.mrf.mxu0 }
 0x137   :  { %v1373_v44 = vpop.f32.mrf.mxu1 }
 0x138   :  { %v1352_v45 = vpop.f32.mrf.mxu0 }
 0x139   :  { %v1353_v48 = vadd.f32 %v1352_v45, %v1351_v43  ;;  %v1374_v49 = vpop.f32.mrf.mxu1 }
 0x13a   :  { %v1354_v50 = vpop.f32.mrf.mxu0  ;;  %v1375_v56 = vadd.f32 %v1374_v49, %v1373_v44 }
 0x13b   :  { %v767_v52 = vadd.f32 %v1353_v48, %v726_v46  ;;  %v1376_v53 = vpop.f32.mrf.mxu1 }
 0x13c   :  { %v1355_v54 = vpop.f32.mrf.mxu0 }
 0x13d   :  { %v1356_v57 = vadd.f32 %v1355_v54, %v1354_v50  ;;  %v1377_v58 = vpop.f32.mrf.mxu1  ;;  %v808_v59 = vadd.f32 %v1375_v56, %v767_v52 }
 0x13e   :  { %v1378_v61 = vadd.f32 %v1377_v58, %v1376_v53 }
 0x13f   :  { %v770_v60 = vadd.f32 %v1356_v57, %v729_v55  ;;  %v814_v63 = vmax.f32 %v808_v59, 0.0 }
 0x141   :  { %v811_v62 = vadd.f32 %v1378_v61, %v770_v60 }
 0x143   :  { %v815_v0 = vmax.f32 %v811_v62, 0.0 }
 0x145   :  { %v816_v1 = vpack.c.bf16 %v815_v0, %v814_v63 }
 0x147   :  { %1423 = vmatmul.mubr.bf16.vlgmr.msra.gmra.mxu0 %v816_v1 }
 0x148   :  { %1462 = vmatprep.mubr.msk.bf16.mxu0 %vm1684_vm0, %v1683_v17  ;;  %1447 = vmatpush3.bf16.msra.mxu0 %v1559_v5 }
 0x149   :  { %1448 = vmatprep.subr.bf16.mxu0 %v1683_v17 }
 0x14c   :  { %1449 = vmatpush3.bf16.msra.mxu0 %v1560_v6 }
 0x14d   :  { %1450 = vmatprep.subr.bf16.mxu0 %v1683_v17 }
 0x150   :  { %1451 = vmatpush3.bf16.msra.mxu0 %v1561_v7 }
 0x151   :  { %1452 = vmatprep.subr.bf16.mxu0 %v1683_v17 }
 0x154   :  { %1453 = vmatpush3.bf16.msra.mxu0 %v1562_v8 }
 0x155   :  { %1454 = vmatprep.subr.bf16.mxu0 %v1683_v17 }
 0x158   :  { %1455 = vmatpush3.bf16.msra.mxu0 %v1563_v9 }
 0x159   :  { %1456 = vmatprep.subr.bf16.mxu0 %v1683_v17 }
 0x15c   :  { %1457 = vmatpush3.bf16.msra.mxu0 %v1564_v23 }
 0x15d   :  { %1458 = vmatprep.subr.bf16.mxu0 %v1683_v17 }
 0x160   :  { %1459 = vmatpush3.bf16.msra.mxu0 %v1565_v24 }
 0x161   :  { %1460 = vmatprep.subr.bf16.mxu0 %v1683_v17  ;;  %v1282_v17 = vld [vmem:[%s1800_s6] ss:$0 sm:$0xff] }
 0x164   :  { %1461 = vmatpush3.bf16.msra.mxu0 %v1566_v25 }
 0x207   :  { %v915_v10 = vpop.f32.mrf.mxu0 }
 0x208   :  { %v922_v11 = vadd.f32 %v915_v10, %v808_v59 }
 0x209   :  { %v1424_v13 = vpop.f32.mrf.mxu0 }
 0x20a   :  { %v931_v15 = vadd.f32 %v1271_v12, %v922_v11 }
 0x20b   :  { %v918_v14 = vpop.f32.mrf.mxu0 }
 0x20c   :  { %v923_v16 = vadd.f32 %v918_v14, %v811_v62  ;;  %v933_v20 = vmax.f32 %v931_v15, 0.0 }
 0x20d   :  { %v1425_v18 = vpop.f32.mrf.mxu0 }
 0x20e   :  { %v932_v19 = vadd.f32 %v1271_v12, %v923_v16 }
 0x210   :  { %v934_v21 = vmax.f32 %v932_v19, 0.0 }
 0x212   :  { %v935_v22 = vpack.c.bf16 %v934_v21, %v933_v20 }
 0x214   :  { %1443 = vmatmul.mubr.bf16.vlgmr.msra.gmra.mxu1 %v935_v22 }
 0x2d4   :  { %v1035_v26 = vpop.f32.mrf.mxu1 }
 0x2d5   :  { %v1042_v27 = vadd.f32 %v1035_v26, %v931_v15 }
 0x2d6   :  { %v1444_v29 = vpop.f32.mrf.mxu1 }
 0x2d7   :  { %v1052_v31 = vadd.f32 %v1281_v28, %v1042_v27 }
 0x2d8   :  { %v1038_v30 = vpop.f32.mrf.mxu1 }
 0x2d9   :  { %v1043_v32 = vadd.f32 %v1038_v30, %v932_v19  ;;  %v1054_v35 = vmax.f32 %v1052_v31, 0.0 }
 0x2da   :  { %v1445_v33 = vpop.f32.mrf.mxu1 }
 0x2db   :  { %v1053_v34 = vadd.f32 %v1281_v28, %v1043_v32 }
 0x2dd   :  { %v1055_v36 = vmax.f32 %v1053_v34, 0.0 }
 0x2df   :  { %v1056_v37 = vpack.c.bf16 %v1055_v36, %v1054_v35 }
 0x2e1   :  { %1463 = vmatmul.mubr.bf16.vlgmr.msra.gmra.mxu0 %v1056_v37 }
 0x3a1   :  { %v1162_v38 = vpop.f32.mrf.mxu0 }
 0x3a2   :  { %v1163_v39 = vadd.f32 %v1282_v17, %v1162_v38 }
 0x3a3   :  { %v1464_v40 = vpop.f32.mrf.mxu0 }
 0x3a4   :  { %1169 = vst [vmem:[#allocation10] sm:$0xff] %v1163_v39 }
 0x3a5   :  { %v1165_v41 = vpop.f32.mrf.mxu0 }
 0x3a6   :  { %v1166_v42 = vadd.f32 %v1282_v17, %v1165_v41 }
 0x3a7   :  { %v1465_v43 = vpop.f32.mrf.mxu0 }
 0x3a8   :  { %1170 = vst [vmem:[#allocation10 + $0x8] sm:$0xff] %v1166_v42 }
 0x3a9   :  { %1658 = shalt.err (!%p1655_p10)
}
 0x3aa   :  { %s1686_s30 = smov 128   ;;  %s1687_s6 = smov 8  }
 0x3ab   :  { %1182 = dma.vmem_to_hbm [thread:$0]  %s1177_s29, 256, %s1801_s7, [#allocation4], %s1686_s30, %s1686_s30, %s1687_s6  }
 0x3ac   :  { %1673 = dma.done.wait [#allocation4], 256  }
 0x3ad   :  { %1674 = vsyncadd [#allocation4], 4294967040 }
 0x3ae   :  { %1186 = vsyncpa [#allocation3], 1 }
 0x3af   :  { %1187 = vsyncpa [#allocation6], 1 }
 0x3b0   :  { %1188 = vsyncpa [#allocation9], 1 }
 0x3b1   :  { %1189 = vsyncpa [#allocation4], 1 }

</bundles_post_ra>
